<compile_context>
chip_gen: v5e
topology: v5e:2x2
jax: 0.10.0
libtpu: 0.0.40
codegen_flags: <defaults>
</compile_context>

<pallas_src>
import jax
import jax.numpy as jnp
from jax import lax
from jax.experimental import pallas as pl
from jax.experimental.pallas import tpu as pltpu

EPS = 1e-5
NEG_INF = -1e30  # large finite negative; avoids exp(-inf - (-inf)) NaN risk


def _layer_norm(y, gamma, beta):
    mu = jnp.mean(y, axis=-1, keepdims=True)
    var = jnp.mean((y - mu) ** 2, axis=-1, keepdims=True)
    return (y - mu) * lax.rsqrt(var + EPS) * gamma + beta


def transformer_layer_kernel(
    x_ref,                # (1, S, D) f32 : one batch element per grid step
    wqkv_ref,             # (D, 3D) bf16  : fused [wq^T/sqrt(D) | wk^T | wv^T]
    wo_ref,               # (D, D)  bf16  : output projection, pre-transposed
    bo_ref,               # (1, D)  f32
    g1_ref, b1_ref,       # (1, D)  f32   : LayerNorm `norm`
    wff_ref, bff_ref,     # (D, D) bf16 (pre-transposed), (1, D) f32
    wff2_ref, bff2_ref,   # (D, D) bf16 (pre-transposed), (1, D) f32
    gff_ref, bffn_ref,    # (1, D)  f32   : LayerNorm `norm_ff`
    mask_ref,             # (S, S)  f32   : additive causal mask (0 / NEG_INF)
    o_ref,                # (1, S, D)
):
    f32 = jnp.float32
    bf16 = jnp.bfloat16

    x = x_ref[0].astype(f32)            # (S, D) residual path kept in f32
    x_bf = x.astype(bf16)
    S, D = x.shape

    # --- fused QKV projection: single MXU matmul, bf16 operands, f32 acc ---
    qkv = jnp.dot(x_bf, wqkv_ref[...], preferred_element_type=f32)   # (S, 3D)
    q = qkv[:, :D].astype(bf16)          # already scaled by 1/sqrt(D)
    k = qkv[:, D:2 * D].astype(bf16)
    v = qkv[:, 2 * D:].astype(bf16)

    # --- scores = q @ k^T (contract on feature dim; no explicit transpose) ---
    scores = lax.dot_general(q, k, (((1,), (1,)), ((), ())),
                             preferred_element_type=f32)
    scores = scores + mask_ref[...]

    # softmax (f32)
    scores = scores - jnp.max(scores, axis=-1, keepdims=True)
    p = jnp.exp(scores)
    p = p * pl.reciprocal(jnp.sum(p, axis=-1, keepdims=True), approx=True)

    attn = jnp.dot(p.astype(bf16), v, preferred_element_type=f32)     # (S, D)

    # --- multi-head output projection (1 head) ---
    attn = jnp.dot(attn.astype(bf16), wo_ref[...],
                   preferred_element_type=f32) + bo_ref[...]

    # --- add & norm ---
    add_norm = _layer_norm(attn + x, g1_ref[...], b1_ref[...])

    # --- feed forward: ff2(relu(ff(add_norm))) ---
    h = jnp.dot(add_norm.astype(bf16), wff_ref[...],
                preferred_element_type=f32) + bff_ref[...]
    h = jnp.maximum(h, 0.0)
    ff = jnp.dot(h.astype(bf16), wff2_ref[...],
                 preferred_element_type=f32) + bff2_ref[...]

    # --- final add & norm ---
    out = _layer_norm(ff + add_norm, gff_ref[...], bffn_ref[...])
    o_ref[0] = out.astype(o_ref.dtype)


def pack_params(params, seq_len):
    """One-time host-side prep: fuse + pre-transpose weights (bf16), fold the
    1/sqrt(D) score scale into wq, build the additive causal mask."""
    D = params["wq"].shape[0]
    scale = 1.0 / jnp.sqrt(jnp.float32(D))
    wqkv = jnp.concatenate(
        [(params["wq"] * scale).T, params["wk"].T, params["wv"].T], axis=1
    ).astype(jnp.bfloat16)                                     # (D, 3D)
    row = jnp.arange(seq_len)
    mask = jnp.where(row[None, :] > row[:, None], NEG_INF, 0.0).astype(jnp.float32)
    return dict(
        wqkv=wqkv,
        wo_t=params["wo"].T.astype(jnp.bfloat16),
        bo=params["bo"].astype(jnp.float32),
        gamma1=params["gamma1"].astype(jnp.float32),
        beta1=params["beta1"].astype(jnp.float32),
        wff_t=params["wff"].T.astype(jnp.bfloat16),
        bff=params["bff"].astype(jnp.float32),
        wff2_t=params["wff2"].T.astype(jnp.bfloat16),
        bff2=params["bff2"].astype(jnp.float32),
        gamma_ff=params["gamma_ff"].astype(jnp.float32),
        beta_ff=params["beta_ff"].astype(jnp.float32),
        mask=mask,
    )


def transformer_layer(x, packed):
    """x: (B, S, D) float32. packed: output of pack_params."""
    B, S, D = x.shape
    # Whole-array VMEM residents: single-buffered, no per-step DMA / index_map.
    vmem = pl.BlockSpec(memory_space=pltpu.MemorySpace.VMEM)

    return pl.pallas_call(
        transformer_layer_kernel,
        out_shape=jax.ShapeDtypeStruct((B, S, D), x.dtype),
        grid_spec=pltpu.PrefetchScalarGridSpec(
            num_scalar_prefetch=0,
            grid=(B,),
            in_specs=[pl.BlockSpec((1, S, D), lambda b: (b, 0, 0))] + [vmem] * 12,
            out_specs=pl.BlockSpec((1, S, D), lambda b: (b, 0, 0)),
        ),
        compiler_params=pltpu.CompilerParams(
            # parallel batch axis: v7x's two TensorCores each take half of B
            dimension_semantics=("parallel",),
            # explicit budget, safe on v5e/v6e/v7x (below 64 MiB physical)
            vmem_limit_bytes=32 * 1024 * 1024,
        ),
    )(
        x,
        packed["wqkv"], packed["wo_t"], packed["bo"],
        packed["gamma1"], packed["beta1"],
        packed["wff_t"], packed["bff"],
        packed["wff2_t"], packed["bff2"],
        packed["gamma_ff"], packed["beta_ff"],
        packed["mask"],
    )


def init_params(key, model_dim):
    """PyTorch-layout parameters: Linear weights are (out, in), f32."""
    D = model_dim
    ks = jax.random.split(key, 8)
    s = 0.05
    return {
        "wq": s * jax.random.normal(ks[0], (D, D), jnp.float32),
        "wk": s * jax.random.normal(ks[1], (D, D), jnp.float32),
        "wv": s * jax.random.normal(ks[2], (D, D), jnp.float32),
        "wo": s * jax.random.normal(ks[3], (D, D), jnp.float32),
        "bo": s * jax.random.normal(ks[4], (1, D), jnp.float32),
        "gamma1": jnp.ones((1, D), jnp.float32),
        "beta1": jnp.zeros((1, D), jnp.float32),
        "wff": s * jax.random.normal(ks[5], (D, D), jnp.float32),
        "bff": s * jax.random.normal(ks[6], (1, D), jnp.float32),
        "wff2": s * jax.random.normal(ks[7], (D, D), jnp.float32),
        "bff2": jnp.zeros((1, D), jnp.float32),
        "gamma_ff": jnp.ones((1, D), jnp.float32),
        "beta_ff": jnp.zeros((1, D), jnp.float32),
    }


def reference(x, p):
    """Pure-JAX f32 reference of TransformerLayer.forward (encoder, 1 head)."""
    B, S, D = x.shape
    q = x @ p["wq"].T
    k = x @ p["wk"].T
    v = x @ p["wv"].T
    scores = jnp.einsum("bqd,bkd->bqk", q, k) / jnp.sqrt(jnp.float32(D))
    mask = (jnp.arange(S)[None, :] > jnp.arange(S)[:, None])
    scores = jnp.where(mask[None], -jnp.inf, scores)
    attn = jax.nn.softmax(scores, axis=-1) @ v
    attn = attn @ p["wo"].T + p["bo"]

    def ln(y, g, b):
        mu = jnp.mean(y, -1, keepdims=True)
        var = jnp.mean((y - mu) ** 2, -1, keepdims=True)
        return (y - mu) / jnp.sqrt(var + EPS) * g + b

    add_norm = ln(attn + x, p["gamma1"], p["beta1"])
    h = jnp.maximum(add_norm @ p["wff"].T + p["bff"], 0.0)
    ff = h @ p["wff2"].T + p["bff2"]
    return ln(ff + add_norm, p["gamma_ff"], p["beta_ff"])


if __name__ == "__main__":
    B, S, D = 2, 8, 32          # batch, seq, model_dim (num_heads=1, encoder)
    key = jax.random.PRNGKey(0)
    kx, kp = jax.random.split(key)
    x = jax.random.normal(kx, (B, S, D), jnp.float32)
    params = init_params(kp, D)
    packed = pack_params(params, S)

    out = jax.block_until_ready(transformer_layer(x, packed))
    ref = reference(x, params)

    assert out.shape == (B, S, D)
    # bf16 MXU operands (f32 accumulation) vs. the pure-f32 reference:
    # tolerance reflects bf16 operand rounding (~1e-3 observed error scale).
    assert jnp.allclose(out, ref, atol=2e-2, rtol=2e-2), "mismatch vs JAX reference"
    print("KERNEL_OK")
</pallas_src>

<mosaic_0001>
module attributes {stable_mosaic.version = 11 : i64} {
  func.func @transformer_layer_kernel(%arg0: i32, %arg1: memref<1x8x32xf32, #tpu.memory_space<vmem>>, %arg2: memref<32x96xbf16, #tpu.memory_space<vmem>>, %arg3: memref<32x32xbf16, #tpu.memory_space<vmem>>, %arg4: memref<1x32xf32, #tpu.memory_space<vmem>>, %arg5: memref<1x32xf32, #tpu.memory_space<vmem>>, %arg6: memref<1x32xf32, #tpu.memory_space<vmem>>, %arg7: memref<32x32xbf16, #tpu.memory_space<vmem>>, %arg8: memref<1x32xf32, #tpu.memory_space<vmem>>, %arg9: memref<32x32xbf16, #tpu.memory_space<vmem>>, %arg10: memref<1x32xf32, #tpu.memory_space<vmem>>, %arg11: memref<1x32xf32, #tpu.memory_space<vmem>>, %arg12: memref<1x32xf32, #tpu.memory_space<vmem>>, %arg13: memref<8x8xf32, #tpu.memory_space<vmem>>, %arg14: memref<1x8x32xf32, #tpu.memory_space<vmem>>) attributes {dimension_semantics = [#tpu.dimension_semantics<parallel>], iteration_bounds = array<i64: 2>, scalar_prefetch = 0 : i64, scratch_operands = 0 : i64, tpu.core_type = #tpu.core_type<tc>, window_params = [{transform_indices = @transform_0, window_bounds = array<i64: 1, 8, 32>}, {pipeline_mode = #tpu.pipeline_mode<synchronous>, transform_indices = @transform_1, window_bounds = array<i64: 32, 96>}, {pipeline_mode = #tpu.pipeline_mode<synchronous>, transform_indices = @transform_2, window_bounds = array<i64: 32, 32>}, {pipeline_mode = #tpu.pipeline_mode<synchronous>, transform_indices = @transform_3, window_bounds = array<i64: 1, 32>}, {pipeline_mode = #tpu.pipeline_mode<synchronous>, transform_indices = @transform_4, window_bounds = array<i64: 1, 32>}, {pipeline_mode = #tpu.pipeline_mode<synchronous>, transform_indices = @transform_5, window_bounds = array<i64: 1, 32>}, {pipeline_mode = #tpu.pipeline_mode<synchronous>, transform_indices = @transform_6, window_bounds = array<i64: 32, 32>}, {pipeline_mode = #tpu.pipeline_mode<synchronous>, transform_indices = @transform_7, window_bounds = array<i64: 1, 32>}, {pipeline_mode = #tpu.pipeline_mode<synchronous>, transform_indices = @transform_8, window_bounds = array<i64: 32, 32>}, {pipeline_mode = #tpu.pipeline_mode<synchronous>, transform_indices = @transform_9, window_bounds = array<i64: 1, 32>}, {pipeline_mode = #tpu.pipeline_mode<synchronous>, transform_indices = @transform_10, window_bounds = array<i64: 1, 32>}, {pipeline_mode = #tpu.pipeline_mode<synchronous>, transform_indices = @transform_11, window_bounds = array<i64: 1, 32>}, {pipeline_mode = #tpu.pipeline_mode<synchronous>, transform_indices = @transform_12, window_bounds = array<i64: 8, 8>}, {transform_indices = @transform_13, window_bounds = array<i64: 1, 8, 32>}]} {
    %c0 = arith.constant 0 : index
    %c0_0 = arith.constant 0 : index
    %c0_1 = arith.constant 0 : index
    %0 = vector.load %arg1[%c0, %c0_0, %c0_1] : memref<1x8x32xf32, #tpu.memory_space<vmem>>, vector<1x8x32xf32>
    %1 = vector.shape_cast %0 : vector<1x8x32xf32> to vector<8x32xf32>
    %2 = arith.truncf %1 : vector<8x32xf32> to vector<8x32xbf16>
    %c0_2 = arith.constant 0 : index
    %c0_3 = arith.constant 0 : index
    %3 = vector.load %arg2[%c0_2, %c0_3] : memref<32x96xbf16, #tpu.memory_space<vmem>>, vector<32x96xbf16>
    %cst = arith.constant dense<0.000000e+00> : vector<8x96xf32>
    %4 = tpu.matmul %2, %3, %cst {dimension_numbers = #tpu.dot_dimension_numbers<[1], [0], [0], [1], [0, 0, 1, 1], [], []>} : vector<8x32xbf16>, vector<32x96xbf16>, vector<8x96xf32> -> vector<8x96xf32>
    %5 = vector.extract_strided_slice %4 {offsets = [0, 0], sizes = [8, 32], strides = [1, 1]} : vector<8x96xf32> to vector<8x32xf32>
    %6 = arith.truncf %5 : vector<8x32xf32> to vector<8x32xbf16>
    %7 = vector.extract_strided_slice %4 {offsets = [0, 32], sizes = [8, 32], strides = [1, 1]} : vector<8x96xf32> to vector<8x32xf32>
    %8 = arith.truncf %7 : vector<8x32xf32> to vector<8x32xbf16>
    %9 = vector.extract_strided_slice %4 {offsets = [0, 64], sizes = [8, 32], strides = [1, 1]} : vector<8x96xf32> to vector<8x32xf32>
    %10 = arith.truncf %9 : vector<8x32xf32> to vector<8x32xbf16>
    %cst_4 = arith.constant dense<0.000000e+00> : vector<8x8xf32>
    %11 = tpu.matmul %6, %8, %cst_4 {dimension_numbers = #tpu.dot_dimension_numbers<[1], [1], [0], [0], [0, 0, 1, 0], [], []>} : vector<8x32xbf16>, vector<8x32xbf16>, vector<8x8xf32> -> vector<8x8xf32>
    %c0_5 = arith.constant 0 : index
    %c0_6 = arith.constant 0 : index
    %12 = vector.load %arg13[%c0_5, %c0_6] : memref<8x8xf32, #tpu.memory_space<vmem>>, vector<8x8xf32>
    %13 = arith.addf %11, %12 : vector<8x8xf32>
    %cst_7 = arith.constant dense<0xFF800000> : vector<8xf32>
    %14 = vector.multi_reduction <maximumf>, %13, %cst_7 [1] : vector<8x8xf32> to vector<8xf32>
    %15 = vector.shape_cast %14 : vector<8xf32> to vector<8x1xf32>
    %16 = vector.broadcast %15 : vector<8x1xf32> to vector<8x8xf32>
    %17 = arith.subf %13, %16 : vector<8x8xf32>
    %18 = math.exp %17 : vector<8x8xf32>
    %cst_8 = arith.constant dense<0.000000e+00> : vector<8xf32>
    %19 = vector.multi_reduction <add>, %18, %cst_8 [1] : vector<8x8xf32> to vector<8xf32>
    %20 = vector.shape_cast %19 : vector<8xf32> to vector<8x1xf32>
    %21 = tpu.reciprocal %20 {approx = true} : vector<8x1xf32> -> vector<8x1xf32>
    %22 = vector.broadcast %21 : vector<8x1xf32> to vector<8x8xf32>
    %23 = arith.mulf %18, %22 : vector<8x8xf32>
    %24 = arith.truncf %23 : vector<8x8xf32> to vector<8x8xbf16>
    %cst_9 = arith.constant dense<0.000000e+00> : vector<8x32xf32>
    %25 = tpu.matmul %24, %10, %cst_9 {dimension_numbers = #tpu.dot_dimension_numbers<[1], [0], [0], [1], [0, 0, 1, 1], [], []>} : vector<8x8xbf16>, vector<8x32xbf16>, vector<8x32xf32> -> vector<8x32xf32>
    %26 = arith.truncf %25 : vector<8x32xf32> to vector<8x32xbf16>
    %c0_10 = arith.constant 0 : index
    %c0_11 = arith.constant 0 : index
    %27 = vector.load %arg3[%c0_10, %c0_11] : memref<32x32xbf16, #tpu.memory_space<vmem>>, vector<32x32xbf16>
    %cst_12 = arith.constant dense<0.000000e+00> : vector<8x32xf32>
    %28 = tpu.matmul %26, %27, %cst_12 {dimension_numbers = #tpu.dot_dimension_numbers<[1], [0], [0], [1], [0, 0, 1, 1], [], []>} : vector<8x32xbf16>, vector<32x32xbf16>, vector<8x32xf32> -> vector<8x32xf32>
    %c0_13 = arith.constant 0 : index
    %c0_14 = arith.constant 0 : index
    %29 = vector.load %arg4[%c0_13, %c0_14] : memref<1x32xf32, #tpu.memory_space<vmem>>, vector<1x32xf32>
    %30 = vector.broadcast %29 : vector<1x32xf32> to vector<8x32xf32>
    %31 = arith.addf %28, %30 : vector<8x32xf32>
    %32 = arith.addf %31, %1 : vector<8x32xf32>
    %c0_15 = arith.constant 0 : index
    %c0_16 = arith.constant 0 : index
    %33 = vector.load %arg5[%c0_15, %c0_16] : memref<1x32xf32, #tpu.memory_space<vmem>>, vector<1x32xf32>
    %c0_17 = arith.constant 0 : index
    %c0_18 = arith.constant 0 : index
    %34 = vector.load %arg6[%c0_17, %c0_18] : memref<1x32xf32, #tpu.memory_space<vmem>>, vector<1x32xf32>
    %cst_19 = arith.constant dense<0.000000e+00> : vector<8xf32>
    %35 = vector.multi_reduction <add>, %32, %cst_19 [1] : vector<8x32xf32> to vector<8xf32>
    %36 = vector.shape_cast %35 : vector<8xf32> to vector<8x1xf32>
    %cst_20 = arith.constant 3.200000e+01 : f32
    %37 = vector.broadcast %cst_20 : f32 to vector<8x1xf32>
    %38 = arith.divf %36, %37 : vector<8x1xf32>
    %39 = vector.broadcast %38 : vector<8x1xf32> to vector<8x32xf32>
    %40 = arith.subf %32, %39 : vector<8x32xf32>
    %41 = arith.mulf %40, %40 : vector<8x32xf32>
    %cst_21 = arith.constant dense<0.000000e+00> : vector<8xf32>
    %42 = vector.multi_reduction <add>, %41, %cst_21 [1] : vector<8x32xf32> to vector<8xf32>
    %43 = vector.shape_cast %42 : vector<8xf32> to vector<8x1xf32>
    %cst_22 = arith.constant 3.200000e+01 : f32
    %44 = vector.broadcast %cst_22 : f32 to vector<8x1xf32>
    %45 = arith.divf %43, %44 : vector<8x1xf32>
    %46 = vector.broadcast %38 : vector<8x1xf32> to vector<8x32xf32>
    %47 = arith.subf %32, %46 : vector<8x32xf32>
    %cst_23 = arith.constant 9.99999974E-6 : f32
    %48 = vector.broadcast %cst_23 : f32 to vector<8x1xf32>
    %49 = arith.addf %45, %48 : vector<8x1xf32>
    %50 = math.rsqrt %49 : vector<8x1xf32>
    %51 = vector.broadcast %50 : vector<8x1xf32> to vector<8x32xf32>
    %52 = arith.mulf %47, %51 : vector<8x32xf32>
    %53 = vector.broadcast %33 : vector<1x32xf32> to vector<8x32xf32>
    %54 = arith.mulf %52, %53 : vector<8x32xf32>
    %55 = vector.broadcast %34 : vector<1x32xf32> to vector<8x32xf32>
    %56 = arith.addf %54, %55 : vector<8x32xf32>
    %57 = arith.truncf %56 : vector<8x32xf32> to vector<8x32xbf16>
    %c0_24 = arith.constant 0 : index
    %c0_25 = arith.constant 0 : index
    %58 = vector.load %arg7[%c0_24, %c0_25] : memref<32x32xbf16, #tpu.memory_space<vmem>>, vector<32x32xbf16>
    %cst_26 = arith.constant dense<0.000000e+00> : vector<8x32xf32>
    %59 = tpu.matmul %57, %58, %cst_26 {dimension_numbers = #tpu.dot_dimension_numbers<[1], [0], [0], [1], [0, 0, 1, 1], [], []>} : vector<8x32xbf16>, vector<32x32xbf16>, vector<8x32xf32> -> vector<8x32xf32>
    %c0_27 = arith.constant 0 : index
    %c0_28 = arith.constant 0 : index
    %60 = vector.load %arg8[%c0_27, %c0_28] : memref<1x32xf32, #tpu.memory_space<vmem>>, vector<1x32xf32>
    %61 = vector.broadcast %60 : vector<1x32xf32> to vector<8x32xf32>
    %62 = arith.addf %59, %61 : vector<8x32xf32>
    %cst_29 = arith.constant 0.000000e+00 : f32
    %63 = vector.broadcast %cst_29 : f32 to vector<8x32xf32>
    %64 = arith.maximumf %62, %63 : vector<8x32xf32>
    %65 = arith.truncf %64 : vector<8x32xf32> to vector<8x32xbf16>
    %c0_30 = arith.constant 0 : index
    %c0_31 = arith.constant 0 : index
    %66 = vector.load %arg9[%c0_30, %c0_31] : memref<32x32xbf16, #tpu.memory_space<vmem>>, vector<32x32xbf16>
    %cst_32 = arith.constant dense<0.000000e+00> : vector<8x32xf32>
    %67 = tpu.matmul %65, %66, %cst_32 {dimension_numbers = #tpu.dot_dimension_numbers<[1], [0], [0], [1], [0, 0, 1, 1], [], []>} : vector<8x32xbf16>, vector<32x32xbf16>, vector<8x32xf32> -> vector<8x32xf32>
    %c0_33 = arith.constant 0 : index
    %c0_34 = arith.constant 0 : index
    %68 = vector.load %arg10[%c0_33, %c0_34] : memref<1x32xf32, #tpu.memory_space<vmem>>, vector<1x32xf32>
    %69 = vector.broadcast %68 : vector<1x32xf32> to vector<8x32xf32>
    %70 = arith.addf %67, %69 : vector<8x32xf32>
    %71 = arith.addf %70, %56 : vector<8x32xf32>
    %c0_35 = arith.constant 0 : index
    %c0_36 = arith.constant 0 : index
    %72 = vector.load %arg11[%c0_35, %c0_36] : memref<1x32xf32, #tpu.memory_space<vmem>>, vector<1x32xf32>
    %c0_37 = arith.constant 0 : index
    %c0_38 = arith.constant 0 : index
    %73 = vector.load %arg12[%c0_37, %c0_38] : memref<1x32xf32, #tpu.memory_space<vmem>>, vector<1x32xf32>
    %cst_39 = arith.constant dense<0.000000e+00> : vector<8xf32>
    %74 = vector.multi_reduction <add>, %71, %cst_39 [1] : vector<8x32xf32> to vector<8xf32>
    %75 = vector.shape_cast %74 : vector<8xf32> to vector<8x1xf32>
    %cst_40 = arith.constant 3.200000e+01 : f32
    %76 = vector.broadcast %cst_40 : f32 to vector<8x1xf32>
    %77 = arith.divf %75, %76 : vector<8x1xf32>
    %78 = vector.broadcast %77 : vector<8x1xf32> to vector<8x32xf32>
    %79 = arith.subf %71, %78 : vector<8x32xf32>
    %80 = arith.mulf %79, %79 : vector<8x32xf32>
    %cst_41 = arith.constant dense<0.000000e+00> : vector<8xf32>
    %81 = vector.multi_reduction <add>, %80, %cst_41 [1] : vector<8x32xf32> to vector<8xf32>
    %82 = vector.shape_cast %81 : vector<8xf32> to vector<8x1xf32>
    %cst_42 = arith.constant 3.200000e+01 : f32
    %83 = vector.broadcast %cst_42 : f32 to vector<8x1xf32>
    %84 = arith.divf %82, %83 : vector<8x1xf32>
    %85 = vector.broadcast %77 : vector<8x1xf32> to vector<8x32xf32>
    %86 = arith.subf %71, %85 : vector<8x32xf32>
    %cst_43 = arith.constant 9.99999974E-6 : f32
    %87 = vector.broadcast %cst_43 : f32 to vector<8x1xf32>
    %88 = arith.addf %84, %87 : vector<8x1xf32>
    %89 = math.rsqrt %88 : vector<8x1xf32>
    %90 = vector.broadcast %89 : vector<8x1xf32> to vector<8x32xf32>
    %91 = arith.mulf %86, %90 : vector<8x32xf32>
    %92 = vector.broadcast %72 : vector<1x32xf32> to vector<8x32xf32>
    %93 = arith.mulf %91, %92 : vector<8x32xf32>
    %94 = vector.broadcast %73 : vector<1x32xf32> to vector<8x32xf32>
    %95 = arith.addf %93, %94 : vector<8x32xf32>
    %c0_44 = arith.constant 0 : index
    %c0_45 = arith.constant 0 : index
    %c0_46 = arith.constant 0 : index
    %96 = vector.load %arg14[%c0_44, %c0_45, %c0_46] : memref<1x8x32xf32, #tpu.memory_space<vmem>>, vector<1x8x32xf32>
    %97 = vector.shape_cast %96 : vector<1x8x32xf32> to vector<8x32xf32>
    %98 = vector.shape_cast %95 : vector<8x32xf32> to vector<1x8x32xf32>
    tpu.vector_store %arg14[%c0_44, %c0_45, %c0_46], %98 {strides = array<i32>} : memref<1x8x32xf32, #tpu.memory_space<vmem>>, vector<1x8x32xf32>,
    return
  }
  func.func @transform_0(%arg0: i32) -> (i32, i32, i32) {
    %c0_i32 = arith.constant 0 : i32
    %c0_i32_0 = arith.constant 0 : i32
    %c0_i32_1 = arith.constant 0 : i32
    return %arg0, %c0_i32, %c0_i32_0 : i32, i32, i32
  }
  func.func @transform_1(%arg0: i32) -> (i32, i32) {
    %c0_i32 = arith.constant 0 : i32
    %c0_i32_0 = arith.constant 0 : i32
    %c0_i32_1 = arith.constant 0 : i32
    return %c0_i32, %c0_i32_0 : i32, i32
  }
  func.func @transform_2(%arg0: i32) -> (i32, i32) {
    %c0_i32 = arith.constant 0 : i32
    %c0_i32_0 = arith.constant 0 : i32
    %c0_i32_1 = arith.constant 0 : i32
    return %c0_i32, %c0_i32_0 : i32, i32
  }
  func.func @transform_3(%arg0: i32) -> (i32, i32) {
    %c0_i32 = arith.constant 0 : i32
    %c0_i32_0 = arith.constant 0 : i32
    %c0_i32_1 = arith.constant 0 : i32
    return %c0_i32, %c0_i32_0 : i32, i32
  }
  func.func @transform_4(%arg0: i32) -> (i32, i32) {
    %c0_i32 = arith.constant 0 : i32
    %c0_i32_0 = arith.constant 0 : i32
    %c0_i32_1 = arith.constant 0 : i32
    return %c0_i32, %c0_i32_0 : i32, i32
  }
  func.func @transform_5(%arg0: i32) -> (i32, i32) {
    %c0_i32 = arith.constant 0 : i32
    %c0_i32_0 = arith.constant 0 : i32
    %c0_i32_1 = arith.constant 0 : i32
    return %c0_i32, %c0_i32_0 : i32, i32
  }
  func.func @transform_6(%arg0: i32) -> (i32, i32) {
    %c0_i32 = arith.constant 0 : i32
    %c0_i32_0 = arith.constant 0 : i32
    %c0_i32_1 = arith.constant 0 : i32
    return %c0_i32, %c0_i32_0 : i32, i32
  }
  func.func @transform_7(%arg0: i32) -> (i32, i32) {
    %c0_i32 = arith.constant 0 : i32
    %c0_i32_0 = arith.constant 0 : i32
    %c0_i32_1 = arith.constant 0 : i32
    return %c0_i32, %c0_i32_0 : i32, i32
  }
  func.func @transform_8(%arg0: i32) -> (i32, i32) {
    %c0_i32 = arith.constant 0 : i32
    %c0_i32_0 = arith.constant 0 : i32
    %c0_i32_1 = arith.constant 0 : i32
    return %c0_i32, %c0_i32_0 : i32, i32
  }
  func.func @transform_9(%arg0: i32) -> (i32, i32) {
    %c0_i32 = arith.constant 0 : i32
    %c0_i32_0 = arith.constant 0 : i32
    %c0_i32_1 = arith.constant 0 : i32
    return %c0_i32, %c0_i32_0 : i32, i32
  }
  func.func @transform_10(%arg0: i32) -> (i32, i32) {
    %c0_i32 = arith.constant 0 : i32
    %c0_i32_0 = arith.constant 0 : i32
    %c0_i32_1 = arith.constant 0 : i32
    return %c0_i32, %c0_i32_0 : i32, i32
  }
  func.func @transform_11(%arg0: i32) -> (i32, i32) {
    %c0_i32 = arith.constant 0 : i32
    %c0_i32_0 = arith.constant 0 : i32
    %c0_i32_1 = arith.constant 0 : i32
    return %c0_i32, %c0_i32_0 : i32, i32
  }
  func.func @transform_12(%arg0: i32) -> (i32, i32) {
    %c0_i32 = arith.constant 0 : i32
    %c0_i32_0 = arith.constant 0 : i32
    %c0_i32_1 = arith.constant 0 : i32
    return %c0_i32, %c0_i32_0 : i32, i32
  }
  func.func @transform_13(%arg0: i32) -> (i32, i32, i32) {
    %c0_i32 = arith.constant 0 : i32
    %c0_i32_0 = arith.constant 0 : i32
    %c0_i32_1 = arith.constant 0 : i32
    return %arg0, %c0_i32, %c0_i32_0 : i32, i32, i32
  }
}

</mosaic_0001>

<bundles_post_ra>
// kernel: tpu_custom_call.1
= control target key start
LH: loop header
LB: loop body
LE: loop exit
PB: predicated region body
PF: predicated region fallthrough
CT: control target
= control target key end

     0   :  { %s1910_s0 = inlined_call_operand.hbm [shape: f32[2,8,32], index: 0, kind: input, shape index: {}]   ;;  %s1911_s1 = inlined_call_operand.hbm [shape: bf16[32,96], index: 1, kind: input, shape index: {}]   ;;  %s1912_s2 = inlined_call_operand.hbm [shape: bf16[32,32], index: 2, kind: input, shape index: {}]   ;;  %s1913_s3 = inlined_call_operand.vmem [shape: f32[1,32], index: 3, kind: input, shape index: {}]   ;;  %s1914_s4 = inlined_call_operand.vmem [shape: f32[1,32], index: 4, kind: input, shape index: {}]   ;;  %s1915_s5 = inlined_call_operand.vmem [shape: f32[1,32], index: 5, kind: input, shape index: {}]   ;;  %s1916_s6 = inlined_call_operand.hbm [shape: bf16[32,32], index: 6, kind: input, shape index: {}]   ;;  %s1917_s7 = inlined_call_operand.hbm [shape: f32[1,32], index: 7, kind: input, shape index: {}]   ;;  %s1918_s8 = inlined_call_operand.hbm [shape: bf16[32,32], index: 8, kind: input, shape index: {}]   ;;  %s1919_s9 = inlined_call_operand.hbm [shape: f32[1,32], index: 9, kind: input, shape index: {}]   ;;  %s1920_s10 = inlined_call_operand.hbm [shape: f32[1,32], index: 10, kind: input, shape index: {}]   ;;  %s1921_s11 = inlined_call_operand.hbm [shape: f32[1,32], index: 11, kind: input, shape index: {}]   ;;  %s1922_s12 = inlined_call_operand.vmem [shape: f32[8,8], index: 12, kind: input, shape index: {}]   ;;  %s1923_s13 = inlined_call_operand.hbm [shape: f32[2,8,32], index: 13, kind: output, shape index: {}]  }
   0x1   :  { %1925 = sst [smem:[#allocation24_spill]] %s1911_s1 }
   0x2   :  { %1926 = sst [smem:[#allocation25_spill]] %s1912_s2 }
   0x3   :  { %1927 = sst [smem:[#allocation26_spill]] %s1914_s4 }
   0x4   :  { %1928 = sst [smem:[#allocation27_spill]] %s1915_s5 }
   0x5   :  { %1929 = sst [smem:[#allocation28_spill]] %s1916_s6 }
   0x6   :  { %1930 = sst [smem:[#allocation29_spill]] %s1917_s7 }
   0x7   :  { %1931 = sst [smem:[#allocation30_spill]] %s1918_s8 }
   0x8   :  { %1932 = sst [smem:[#allocation31_spill]] %s1923_s13 }
   0x9   :  { %18 = vsyncpa [#allocation3], 0 }
   0xa   :  { %20 = vsyncpa [#allocation3 + $0x1], 0 }
   0xb   :  { %21 = vsyncpa [#allocation6], 0 }
   0xc   :  { %22 = vsyncpa [#allocation9], 0 }
   0xd   :  { %23 = vsyncpa [#allocation12], 0 }
   0xe   :  { %24 = vsyncpa [#allocation15], 0 }
   0xf   :  { %25 = vsyncpa [#allocation4], 0 }
  0x10   :  { %27 = vsyncpa [#allocation4 + $0x1], 0  ;;  %s1685_s25 = smov 0   ;;  %s1687_s26 = smov 0  }
  0x11   :  { %s1689_s27 = smov 0   ;;  %s1691_s28 = smov 0  }
  0x12 LB: > { %s1933_s1 = sld [smem:[#allocation24_spill]]  ;;  %s1709_s15 = sadd.s32 4294967295, %s1600_s28   ;;  %s1600_s28 = sphi %s1691_s28, %s1952_s28   ;;  %s1596_s27 = sphi %s1689_s27, %s1951_s27   ;;  %s1592_s26 = sphi %s1687_s26, %s1950_s26   ;;  %s1588_s25 = sphi %s1685_s25, %s1949_s25  }
  0x13   : > { %p1026_p0 = scmp.ge.s32.totalorder %s1600_s28, 1  ;;  %p54_p1 = scmp.eq.s32.totalorder %s1709_s15, 0 }
  0x14   : > { %p342_p2 = scmp.lt.s32.totalorder %s1600_s28, 3  ;;  %s1602_s17 = smov [#allocation5]  }
  0x15   : > { %s355_s18 = sshll.u32 %s1602_s17, 4  ;;  %s1935_s6 = sld [smem:[#allocation28_spill]]  ;;  %s356_s18 = int_to_ptr.vmem [resolvable:$true] %s355_s18 }
  0x16   : > { %p1714_p3 = pnand %p1026_p0, %p342_p2  ;;  %s1937_s8 = sld [smem:[#allocation30_spill]] }
  0x17   : > { %s1603_s30 = smov [#allocation8]   ;;  %s1605_s13 = smov 4  }
  0x18   : > { %s353_s14 = sshll.u32 %s1933_s1, 4  ;;  %p1135_p4 = pneg %p1714_p3  ;;  %s354_s14 = int_to_ptr.hbm [resolvable:$true] %s353_s14 }
  0x19   : > { %s392_s17 = sshll.u32 %s1603_s30, 4  ;;  %s1604_s1 = smov 64   ;;  %s393_s17 = int_to_ptr.vmem [resolvable:$true] %s392_s17 }
  0x1a   : > { %p1726_p6 = pnand %p1135_p4, %p54_p1  ;;  %s1606_s5 = smov [#allocation11]  }
  0x1b   : > { %s390_s21 = sshll.u32 %s1935_s6, 4  ;;  %s443_s6 = sshll.u32 %s1920_s10, 4  ;;  %s391_s21 = int_to_ptr.hbm [resolvable:$true] %s390_s21  ;;  %s444_s6 = int_to_ptr.hbm [resolvable:$true] %s443_s6 }
  0x1c   : > { %s416_s29 = sshll.u32 %s1937_s8, 4  ;;  %s418_s4 = sshll.u32 %s1606_s5, 4  ;;  %s417_s29 = int_to_ptr.hbm [resolvable:$true] %s416_s29  ;;  %s419_s4 = int_to_ptr.vmem [resolvable:$true] %s418_s4 }
  0x1d   : > { %1138 = dma.hbm_to_vmem [thread:$0]  (!%p1726_p6), %s354_s14, 256, %s356_s18, [#allocation6], %s1604_s1, %s1604_s1, %s1605_s13  }
  0x1e   : > { %1144 = dma.hbm_to_vmem [thread:$0]  (!%p1726_p6), %s391_s21, 256, %s393_s17, [#allocation9], %s1604_s1, %s1604_s1, %s1605_s13  }
  0x1f   : > { %1150 = dma.hbm_to_vmem [thread:$0]  (!%p1726_p6), %s417_s29, 256, %s419_s4, [#allocation12], %s1604_s1, %s1604_s1, %s1605_s13  }
  0x20   : > { %s1607_s23 = smov [#allocation14]   ;;  %s1938_s2 = sld [smem:[#allocation25_spill]] }
  0x21   : > { %s445_s24 = sshll.u32 %s1607_s23, 4  ;;  %s1939_s7 = sld [smem:[#allocation29_spill]]  ;;  %s446_s24 = int_to_ptr.vmem [resolvable:$true] %s445_s24 }
  0x22   : > { %1156 = dma.hbm_to_vmem [thread:$0]  (!%p1726_p6), %s444_s6, 16, %s446_s24, [#allocation15]  }
  0x23   : > { %s1608_s5 = smov [#allocation7]   ;;  %s1609_s4 = smov [#allocation10]  }
  0x24   : > { %s369_s19 = sshll.u32 %s1608_s5, 4  ;;  %s407_s8 = sshll.u32 %s1609_s4, 4  ;;  %s370_s19 = int_to_ptr.vmem [resolvable:$true] %s369_s19  ;;  %s408_s8 = int_to_ptr.vmem [resolvable:$true] %s407_s8 }
  0x25   : > { %s431_s6 = sshll.u32 %s1919_s9, 4  ;;  %s1025_s21 = sadd.s32 4294967294, %s1600_s28   ;;  %s432_s6 = int_to_ptr.hbm [resolvable:$true] %s431_s6 }
  0x26   : > { %s367_s14 = sshll.u32 %s1938_s2, 4  ;;  %p47_p8 = scmp.ne.s32.totalorder %s1596_s27, %s1592_s26  ;;  %s368_s14 = int_to_ptr.hbm [resolvable:$true] %s367_s14 }
  0x27   : > { %s405_s17 = sshll.u32 %s1939_s7, 4  ;;  %p48_p9 = scmp.eq.s32.totalorder %s1600_s28, 0  ;;  %s406_s17 = int_to_ptr.hbm [resolvable:$true] %s405_s17 }
  0x28   : > { %1141 = dma.hbm_to_vmem [thread:$0]  (!%p1726_p6), %s368_s14, 256, %s370_s19, [#allocation6], %s1604_s1, %s1604_s1, %s1605_s13  }
  0x29   : > { %1147 = dma.hbm_to_vmem [thread:$0]  (!%p1726_p6), %s406_s17, 16, %s408_s8, [#allocation9]  }
  0x2a   : > { %s455_s1 = sshll.u32 %s1921_s11, 4  ;;  %s1610_s13 = smov [#allocation13]   ;;  %s456_s1 = int_to_ptr.hbm [resolvable:$true] %s455_s1 }
  0x2b   : > { %s433_s30 = sshll.u32 %s1610_s13, 4  ;;  %s1611_s14 = smov [#allocation16]   ;;  %s434_s30 = int_to_ptr.vmem [resolvable:$true] %s433_s30 }
  0x2c   : > { %1153 = dma.hbm_to_vmem [thread:$0]  (!%p1726_p6), %s432_s6, 16, %s434_s30, [#allocation12]  }
  0x2d   : > { %s457_s18 = sshll.u32 %s1611_s14, 4  ;;  %s1766_s17 = sadd.s32 1, %s1600_s28   ;;  %s458_s18 = int_to_ptr.vmem [resolvable:$true] %s457_s18 }
  0x2e   : > { %1159 = dma.hbm_to_vmem [thread:$0]  (!%p1726_p6), %s456_s1, 16, %s458_s18, [#allocation15]  }
  0x2f   : > { %s37_s5 = ssub.s32 %s1600_s28, %s1766_s17  ;;  %s40_s19 = sadd.s32 1, %s1596_s27 }
  0x30   : > { %p38_p7 = scmp.eq.s32.totalorder %s37_s5, 0  ;;  %p53_p10 = scmp.ne.s32.totalorder %s1592_s26, %s1588_s25 }
  0x31   : > { %p1779_p11 = por %p48_p9, %p47_p8  ;;  %p329_p13 = scmp.eq.s32.totalorder %s1709_s15, 1 }
  0x32   : > { %s1777_s4 = scalar_select %p38_p7, %s1596_s27, %s40_s19  }
  0x33   : > { %p1785_p12 = por %p54_p1, %p53_p10  ;;  %p335_p0 = scmp.eq.s32.totalorder %s1025_s21, 1 }
  0x34   : > { %p1176_p2 = scmp.lt.s32.totalorder %s1600_s28, 2  ;;  %s471_s29 = sand.u32 1, %s1596_s27  }
  0x35   : > { %p1792_p4 = por %p329_p13, %p47_p8  ;;  %p1796_p6 = por %p335_p0, %p53_p10 }
  0x36   : > { %s1036_s23 = sshll.u32 %s471_s29, 3  ;;  %s1037_s24 = sshll.u32 %s1600_s28, 3 }
  0x37   : > { %s479_s30 = scalar_lea.hbm %s1910_s0, %s1037_s24  ;;  %s475_s14 = scalar_lea.vmem [#allocation2], %s1036_s23 }
  0x38   : > { %s483_s18 = sshll.u32 %s475_s14, 4  ;;  %s481_s5 = sshll.u32 %s479_s30, 4  ;;  %s484_s18 = int_to_ptr.vmem [resolvable:$true] %s483_s18  ;;  %s482_s5 = int_to_ptr.hbm [resolvable:$true] %s481_s5 }
  0x39   : > { %p1806_p7 = pnand %p1176_p2, %p1779_p11  ;;  %s472_s19 = scalar_lea.sflag [#allocation3], %s471_s29 }
  0x3a   : > { %s1488_s2 = sshra.s32 %s482_s5, 4  ;;  %s1495_s1 = scalar_lea.hbm %s1910_s0, 16  ;;  %s1489_s2 = int_to_ptr.hbm [resolvable:$true] %s1488_s2 }
  0x3b   : > { %s1490_s7 = scalar_lea.hbm %s1489_s2, 8  ;;  %p1492_p9 = pneg %p1806_p7 }
  0x3c   : > { %p1491_p8 = scmp.ne.s32.totalorder %s1489_s2, %s1490_s7  ;;  %p1496_p11 = scmp.lt.s32.totalorder %s1489_s2, %s1910_s0 }
  0x3d   : > { %p1497_p0 = scmp.lt.s32.totalorder %s1495_s1, %s1490_s7 }
  0x3e   : > { %p1493_p10 = pnand %p1492_p9, %p1491_p8 }
  0x3f   : > { %p1498_p2 = por %p1497_p0, %p1496_p11 }
  0x40   : > { %p1494_p13 = pneg %p1493_p10 }
  0x42   : > { %p1499_p5 = pnand %p1498_p2, %p1494_p13 }
  0x44   : > { %1502 = shalt.err (!%p1499_p5)
}
  0x45   : > { %1163 = dma.hbm_to_vmem [thread:$0]  (!%p1806_p7), %s482_s5, 128, %s484_s18, %s472_s19  }
  0x46   : > { %492 = sbr.rel (%p1714_p3) target bundleno = 1823 (0x71f), region = 72  ;;  %s1823_s29 = sand.u32 (!%p1714_p3), 1, %s1592_s26  }
  0x47   : > { %s1039_s30 = sshll.u32 (!%p1714_p3), %s1823_s29, 3  ;;  %s495_s14 = scalar_lea.sflag (!%p1714_p3), [#allocation3], %s1823_s29 }
  0x48   : > { %s498_s2 = scalar_lea.vmem (!%p1714_p3), [#allocation2], %s1039_s30 }
  0x4b   : > { %1563 = dma.done.wait (%p1785_p12), %s495_s14, 128  }
  0x4c   : > { %1565 = vsyncadd (%p1785_p12), %s495_s14, 4294967168 }
  0x4d   : > { %1567 = dma.done.wait (%p54_p1), [#allocation6], 512  }
  0x4e   : > { %1569 = vsyncadd (%p54_p1), [#allocation6], 4294966784 }
  0x4f   : > { %1571 = dma.done.wait (%p54_p1), [#allocation9], 272  }
  0x50   : > { %1573 = vsyncadd (%p54_p1), [#allocation9], 4294967024 }
  0x51   : > { %1575 = dma.done.wait (%p54_p1), [#allocation12], 272  }
  0x52   : > { %1577 = vsyncadd (%p54_p1), [#allocation12], 4294967024 }
  0x53   : > { %1579 = dma.done.wait (%p54_p1), [#allocation15], 32  }
  0x54   : > { %1581 = vsyncadd (%p54_p1), [#allocation15], 4294967264  ;;  %v1092_v0 = vld [vmem:[#allocation5 + $0x8] sm:$0xff]  ;;  %v1091_v1 = vld [vmem:[#allocation5] sm:$0xff]  ;;  %vm601_vm0 = vcmask 261120   ;;  %s1612_s7 = smov 96  }
  0x55   : > { %v583_v2 = vld [vmem:[%s498_s2] sm:$0xff]  ;;  %611 = vmatpush.bf16.msra.mxu0 %v1092_v0  ;;  %vm642_vm1 = vcmask 64512   ;;  %s1613_s18 = smov 64   ;;  %vm660_vm2 = vcmask 1043456   ;;  %v1614_v36 = vmov 32.0   ;;  %v1096_v48 = vld [vmem:[#allocation8 + $0x8] sm:$0xff] }
  0x56   : > { %v584_v3 = vpack.c.bf16 %v583_v2, %v583_v2  ;;  %v619_v9 = vld [vmem:[%s1922_s12] sm:$0xff]  ;;  %v1094_v19 = vld [vmem:[#allocation7 + $0x8] sm:$0xff]  ;;  %v1095_v49 = vld [vmem:[#allocation8] sm:$0xff]  ;;  %s1945_s24 = sld [smem:[#allocation26_spill]]  ;;  %s1088_s14 = sshll.u32 %s1709_s15, 3 }
  0x57   : > { %707 = vmatpush.bf16.msra.mxu3 %v1094_v19  ;;  %v1093_v26 = vld [vmem:[#allocation7] sm:$0xff]  ;;  %v1098_v50 = vld [vmem:[#allocation11 + $0x8] sm:$0xff]  ;;  %s1946_s8 = sld [smem:[#allocation27_spill]]  ;;  %s864_s15 = scalar_lea.sflag [#allocation4], %s1823_s29 }
  0x58   : > { %v1231_v30 = vld [vmem:[%s1913_s3] ss:$0 sm:$0xff]  ;;  %v1097_v53 = vld [vmem:[#allocation11] sm:$0xff]  ;;  %s1947_s16 = sld [smem:[#allocation31_spill]] }
  0x59   : > { %612 = vmatpush.bf16.msra.mxu0 %v1091_v1 }
  0x5b   : > { %708 = vmatpush.bf16.msra.mxu3 %v1093_v26 }
  0x5c   : > { %1057 = vmatmul.msk.bf16.vlgmr.msra.gmra.mxu0 %vm601_vm0, %v584_v3  ;;  %v1232_v61 = vld [vmem:[%s1945_s24] ss:$0 sm:$0xff] }
  0x5d   : > { %822 = vmatpush.bf16.msrb.mxu0 %v1098_v50  ;;  %v1233_v0 = vld [vmem:[%s1946_s8] ss:$0 sm:$0xff] }
  0x5e   : > { %s874_s22 = scalar_lea.hbm %s1947_s16, %s1088_s14 }
  0x5f   : > { %s878_s21 = sshll.u32 %s874_s22, 4  ;;  %s879_s21 = int_to_ptr.hbm [resolvable:$true] %s878_s21 }
  0x60   : > { %s1532_s19 = sshra.s32 %s879_s21, 4  ;;  %s1533_s19 = int_to_ptr.hbm [resolvable:$true] %s1532_s19 }
  0x61   : > { %823 = vmatpush.bf16.msrb.mxu0 %v1097_v53  ;;  %s1534_s23 = scalar_lea.hbm %s1533_s19, 8  ;;  %p1539_p12 = scmp.lt.s32.totalorder %s1533_s19, %s1947_s16 }
  0x62   : > { %p1535_p1 = scmp.ne.s32.totalorder %s1533_s19, %s1534_s23 }
  0x64   : > { %p1536_p3 = pnand %p1535_p1, %p1792_p4 }
  0x66   : > { %p1537_p5 = pneg %p1536_p3 }
  0xd9   : > { %v614_v4 = vpop.f32.mrf.mxu0 }
  0xda   : > { %v618_v5 = vpack.c.bf16 %v614_v4, %v614_v4  ;;  %v1234_v4 = vld [vmem:[#allocation10] ss:$0 sm:$0xff] }
  0xdc   : > { %621 = vrot.lane.b32.xlu0 %v618_v5, %s1612_s7 }
  0xe1   : > { %v616_v6 = vpop.f32.mrf.mxu0 }
 0x14e   : > { %v622_v7 = vpop.permute.xlu0 %621 }
 0x14f   : > { %v627_v8 = vsel %vm601_vm0, %v622_v7, 0 }
 0x150   : > { %636 = vmatpush.bf16.xpose.msra.mxu1 %v627_v8 }
 0x157   : > { %1058 = vmatmul.msk.bf16.vlgmr.msra.gmra.mxu1 %vm601_vm0, %v618_v5 }
 0x1d4   : > { %v638_v10 = vpop.f32.mrf.mxu1 }
 0x1d5   : > { %v639_v11 = vadd.f32 %v638_v10, %v619_v9  ;;  %v1235_v10 = vld [vmem:[#allocation13] ss:$0 sm:$0xff] }
 0x1d7   : > { %v643_v12 = vsel %vm642_vm1, %v639_v11, -inf }
 0x1d8   : > { %644 = vmax.xlane.f32.xlu0 %v643_v12 }
 0x1dc   : > { %v640_v13 = vpop.f32.mrf.mxu1 }
 0x24b   : > { %v645_v14 = vpop.xlane.xlu0 %644 }
 0x24c   : > { %v646_v15 = vsub.f32 %v639_v11, %v645_v14 }
 0x24e   : > { %v647_v16 = vmul.f32 1.442695, %v646_v15 }
 0x250   : > { %1238 = vpow2.f32 %v647_v16 }
 0x256   : > { %v1239_v17 = vpop.eup %1238 }
 0x257   : > { %v649_v18 = vsel %vm642_vm1, %v1239_v17, 0.0 }
 0x258   : > { %650 = vadd.xlane.f32.xlu1 %v649_v18 }
 0x271   : > { %655 = vrot.lane.b32.xlu1 %v618_v5, %s1613_s18  ;;  %s581_s18 = scalar_lea.vmem [#allocation17], %s1039_s30  ;;  %s1538_s30 = scalar_lea.hbm %s1947_s16, 16 }
 0x272   : > { %s876_s5 = sshll.u32 %s581_s18, 4  ;;  %p1540_p7 = scmp.lt.s32.totalorder %s1538_s30, %s1534_s23  ;;  %s877_s5 = int_to_ptr.vmem [resolvable:$true] %s876_s5 }
 0x274   : > { %p1541_p8 = por %p1540_p7, %p1539_p12 }
 0x276   : > { %p1542_p9 = pnand %p1541_p8, %p1537_p5 }
 0x2cb   : > { %v651_v20 = vpop.xlane.xlu1 %650 }
 0x2cc   : > { %1240 = vrcp.f32 %v651_v20 }
 0x2cd   : > { %1242 = vrcp.f32 %v1614_v36 }
 0x2d2   : > { %v1241_v21 = vpop.eup %1240 }
 0x2d3   : > { %v653_v22 = vmul.f32 %v1241_v21, %v1239_v17  ;;  %v1243_v37 = vpop.eup %1242 }
 0x2d4   : > { %v721_v38 = vmul.f32 32.0, %v1243_v37  ;;  %vm725_vm3 = vweird.f32 %v1243_v37 }
 0x2d5   : > { %v654_v25 = vpack.c.bf16 %v653_v22, %v653_v22 }
 0x2d6   : > { %v722_v39 = vsub.f32 1.0, %v721_v38 }
 0x2d8   : > { %v723_v40 = vmul.f32 %v1243_v37, %v722_v39 }
 0x2da   : > { %v724_v41 = vadd.f32 %v1243_v37, %v723_v40 }
 0x2dc   : > { %v726_v42 = vsel %vm725_vm3, %v1243_v37, %v724_v41 }
 0x2e3   : > { %v656_v23 = vpop.permute.xlu1 %655 }
 0x2e4   : > { %v662_v24 = vsel %vm660_vm2, %v656_v23, 0 }
 0x2e5   : > { %671 = vmatpush.bf16.msra.mxu2 %v662_v24 }
 0x2e8   : > { %1059 = vmatmul.msk.bf16.vlgmr.msra.gmra.mxu2 %vm642_vm1, %v654_v25 }
 0x2e9   : > { %784 = vmatpush.bf16.msrb.mxu2 %v1096_v48 }
 0x2ed   : > { %785 = vmatpush.bf16.msrb.mxu2 %v1095_v49 }
 0x36b   : > { %v673_v27 = vpop.f32.mrf.mxu2 }
 0x36c   : > { %v677_v28 = vpack.c.bf16 %v673_v27, %v673_v27 }
 0x36e   : > { %1068 = vmatmul.msk.bf16.vlgmr.msra.gmra.mxu3 %vm601_vm0, %v677_v28 }
 0x373   : > { %v675_v29 = vpop.f32.mrf.mxu2 }
 0x3f1   : > { %v710_v31 = vpop.f32.mrf.mxu3 }
 0x3f2   : > { %v711_v32 = vadd.f32 %v1231_v30, %v710_v31  ;;  %v1236_v30 = vld [vmem:[#allocation14] ss:$0 sm:$0xff] }
 0x3f4   : > { %v714_v33 = vadd.f32 %v711_v32, %v583_v2 }
 0x3f6   : > { %v717_v34 = vsel %vm601_vm0, %v714_v33, 0.0 }
 0x3f7   : > { %718 = vadd.xlane.f32.xlu2 %v717_v34 }
 0x3f9   : > { %v712_v35 = vpop.f32.mrf.mxu3 }
 0x46a   : > { %v719_v43 = vpop.xlane.xlu2 %718 }
 0x46b   : > { %v727_v44 = vmul.f32 %v726_v42, %v719_v43 }
 0x46d   : > { %v728_v45 = vsub.f32 %v714_v33, %v727_v44  ;;  %v1237_v33 = vld [vmem:[#allocation16] ss:$0 sm:$0xff] }
 0x46f   : > { %v729_v46 = vmul.f32 %v728_v45, %v728_v45 }
 0x471   : > { %v730_v47 = vsel %vm601_vm0, %v729_v46, 0.0 }
 0x472   : > { %731 = vadd.xlane.f32.xlu2 %v730_v47 }
 0x4e5   : > { %v732_v51 = vpop.xlane.xlu2 %731 }
 0x4e6   : > { %v733_v52 = vmul.f32 %v732_v51, %v726_v42 }
 0x4e8   : > { %v734_v54 = vadd.f32 1e-05, %v733_v52 }
 0x4ea   : > { %1244 = vrsqrt.f32 %v734_v54  ;;  %vm741_vm5 = vweird.f32 %v734_v54 }
 0x4f0   : > { %v1245_v55 = vpop.eup %1244 }
 0x4f1   : > { %v736_v56 = vmul.f32 %v1245_v55, %v734_v54  ;;  %vm742_vm4 = vweird.f32 %v1245_v55 }
 0x4f2   : > { %vm743_vm6 = vmor %vm741_vm5, %vm742_vm4 }
 0x4f3   : > { %v737_v57 = vmul.f32 %v1245_v55, %v736_v56 }
 0x4f5   : > { %v738_v58 = vmul.f32 0.5, %v737_v57 }
 0x4f7   : > { %v739_v59 = vsub.f32 1.5, %v738_v58 }
 0x4f9   : > { %v740_v60 = vmul.f32 %v1245_v55, %v739_v59 }
 0x4fb   : > { %v744_v62 = vsel %vm743_vm6, %v1245_v55, %v740_v60 }
 0x4fc   : > { %v745_v63 = vmul.f32 %v744_v62, %v728_v45 }
 0x4fe   : > { %v749_v1 = vmul.f32 %v1232_v61, %v745_v63 }
 0x500   : > { %v753_v2 = vadd.f32 %v1233_v0, %v749_v1 }
 0x502   : > { %v754_v3 = vpack.c.bf16 %v753_v2, %v753_v2 }
 0x504   : > { %1077 = vmatmul.msk.bf16.vlgmr.msrb.gmra.mxu2 %vm601_vm0, %v754_v3 }
 0x587   : > { %v787_v5 = vpop.f32.mrf.mxu2 }
 0x588   : > { %v788_v6 = vadd.f32 %v1234_v4, %v787_v5 }
 0x58a   : > { %v791_v7 = vmax.f32 %v788_v6, 0.0 }
 0x58c   : > { %v792_v8 = vpack.c.bf16 %v791_v7, %v791_v7 }
 0x58e   : > { %1086 = vmatmul.msk.bf16.vlgmr.msrb.gmra.mxu0 %vm601_vm0, %v792_v8 }
 0x58f   : > { %v789_v9 = vpop.f32.mrf.mxu2 }
 0x60b   : > { %v825_v11 = vpop.f32.mrf.mxu0 }
 0x60c   : > { %v826_v12 = vadd.f32 %v1235_v10, %v825_v11 }
 0x60e   : > { %v829_v13 = vadd.f32 %v826_v12, %v753_v2 }
 0x610   : > { %v832_v14 = vsel %vm601_vm0, %v829_v13, 0.0 }
 0x611   : > { %833 = vadd.xlane.f32.xlu2 %v832_v14 }
 0x613   : > { %v827_v15 = vpop.f32.mrf.mxu0 }
 0x684   : > { %v834_v16 = vpop.xlane.xlu2 %833 }
 0x685   : > { %v835_v17 = vmul.f32 %v834_v16, %v726_v42 }
 0x687   : > { %v836_v18 = vsub.f32 %v829_v13, %v835_v17 }
 0x689   : > { %v837_v19 = vmul.f32 %v836_v18, %v836_v18 }
 0x68b   : > { %v838_v20 = vsel %vm601_vm0, %v837_v19, 0.0 }
 0x68c   : > { %839 = vadd.xlane.f32.xlu2 %v838_v20 }
 0x6ff   : > { %v840_v21 = vpop.xlane.xlu2 %839 }
 0x700   : > { %v841_v22 = vmul.f32 %v840_v21, %v726_v42 }
 0x702   : > { %v842_v23 = vadd.f32 1e-05, %v841_v22 }
 0x704   : > { %1246 = vrsqrt.f32 %v842_v23  ;;  %vm849_vm8 = vweird.f32 %v842_v23 }
 0x70a   : > { %v1247_v24 = vpop.eup %1246 }
 0x70b   : > { %v844_v25 = vmul.f32 %v1247_v24, %v842_v23  ;;  %vm850_vm7 = vweird.f32 %v1247_v24 }
 0x70c   : > { %vm851_vm9 = vmor %vm849_vm8, %vm850_vm7 }
 0x70d   : > { %v845_v26 = vmul.f32 %v1247_v24, %v844_v25 }
 0x70f   : > { %v846_v27 = vmul.f32 0.5, %v845_v26 }
 0x711   : > { %v847_v28 = vsub.f32 1.5, %v846_v27 }
 0x713   : > { %v848_v29 = vmul.f32 %v1247_v24, %v847_v28 }
 0x715   : > { %v852_v31 = vsel %vm851_vm9, %v1247_v24, %v848_v29 }
 0x716   : > { %v853_v32 = vmul.f32 %v852_v31, %v836_v18 }
 0x718   : > { %v857_v34 = vmul.f32 %v1236_v30, %v853_v32 }
 0x71a   : > { %v861_v35 = vadd.f32 %v1237_v33, %v857_v34 }
 0x71c   : > { %862 = vst.msk [vmem:[%s581_s18] sm:$0xff] %vm601_vm0, %v861_v35 }
 0x71d   : > { %1545 = shalt.err (!%p1542_p9)
}
 0x71e   : > { %1133 = dma.vmem_to_hbm [thread:$0]  (%p1792_p4), %s877_s5, 128, %s879_s21, %s864_s15  }
 0x71f PF: > { %s890_s29 = sand.u32 1, %s1588_s25   ;;  %p1948_p10 = scmp.ge.s32.totalorder %s1600_s28, 2 }
 0x720   : > { %s891_s14 = scalar_lea.sflag [#allocation4], %s890_s29 }
 0x721   : > { %p1165_p13 = pnand %p1948_p10, %p1796_p6 }
 0x723   : > { %p1166_p11 = pneg %p1165_p13 }
 0x725   : > { %1583 = dma.done.wait (%p1166_p11), %s891_s14, 128  }
 0x726   : > { %1585 = vsyncadd (%p1166_p11), %s891_s14, 4294967168  ;;  %p30_p0 = scmp.ge.s32.totalorder %s1766_s17, 4   ;;  %s1949_s25 = smov %s1592_s26 }
 0x727   : > { %s1950_s26 = smov %s1596_s27  ;;  %s1951_s27 = smov %s1777_s4 }
 0x728   : > { %s1952_s28 = smov %s1766_s17  ;;  %32 = sbr.rel (!%p30_p0) target bundleno = 18 (0x12), region = 149 }
 0x72d   :  { %897 = vsyncpa [#allocation3], 1 }
 0x72e   :  { %899 = vsyncpa [#allocation3 + $0x1], 1 }
 0x72f   :  { %900 = vsyncpa [#allocation6], 1 }
 0x730   :  { %901 = vsyncpa [#allocation9], 1 }
 0x731   :  { %902 = vsyncpa [#allocation12], 1 }
 0x732   :  { %903 = vsyncpa [#allocation15], 1 }
 0x733   :  { %904 = vsyncpa [#allocation4], 1 }
 0x734   :  { %906 = vsyncpa [#allocation4 + $0x1], 1 }

</bundles_post_ra>
